<compile_context>
chip_gen: v7x
topology: tpu7x:2x2x1
jax: 0.10.0
libtpu: 0.0.40
codegen_flags: <defaults>
</compile_context>

<pallas_src>
import math

import jax
import jax.numpy as jnp
from jax.experimental import pallas as pl
from jax.experimental.pallas import tpu as pltpu

GRAPH_KEYS = ("n", "poi", "s", "d")


# ----------------------------------------------------------------------------
# Fused multi-graph / multi-layer kernel
# ----------------------------------------------------------------------------
def _sfc_gcn_kernel(gamma_ref,    # SMEM (L,)       raw gamma params (scalar prefetch)
                    feat_ref,     # VMEM (N, E)     f32, shared initial features
                    adj_ref,      # VMEM (N, N)     bf16, graph g (resident across layers)
                    s_ref,        # VMEM (N, N)     bf16, graph g (resident across layers)
                    w_ref,        # VMEM (E, E)     bf16, layer l
                    b_ref,        # VMEM (1, E)     f32,  layer l
                    bnw_ref,      # VMEM (1, E)     f32,  layer l (identity-padded for last)
                    bnb_ref,      # VMEM (1, E)     f32,  layer l (identity-padded for last)
                    out_ref,      # VMEM (N, E)     f32,  graph g
                    emb_scr,      # VMEM (N, E)     f32 scratch: embedding carried over layers
                    deg0_scr,     # VMEM (N, 1)     f32 scratch: rowsum(adj)
                    deg1_scr):    # VMEM (N, 1)     f32 scratch: rowsum(adj * S)
    layer = pl.program_id(1)
    n_layers = pl.num_programs(1)

    # adj / S are VMEM-resident for this graph; upcast once for f32 VPU math.
    adj = adj_ref[...].astype(jnp.float32)
    s = s_ref[...].astype(jnp.float32)

    @pl.when(layer == 0)
    def _init():
        # Reset the carried embedding and compute the gamma-independent degree
        # pieces once per graph:  rowsum(adj*(1+g*S)) == deg0 + g*deg1.
        emb_scr[...] = feat_ref[...]
        deg0_scr[...] = jnp.sum(adj, axis=-1, keepdims=True)
        deg1_scr[...] = jnp.sum(adj * s, axis=-1, keepdims=True)

    gamma = jax.nn.sigmoid(gamma_ref[layer])
    emb = emb_scr[...]                                         # (N, E) f32

    adj_mod = adj * (1.0 + gamma * s)                          # modulated adjacency (f32)
    dis = jax.lax.rsqrt(deg0_scr[...] + gamma * deg1_scr[...]) # (N, 1), EUP rsqrt

    # GCN propagation: D^{-1/2} A D^{-1/2} (x @ W)  ==  dis * (A @ (dis * (x@W)))
    # bf16 MXU operands, f32 accumulation.
    support = jnp.dot(emb.astype(jnp.bfloat16), w_ref[...],
                      preferred_element_type=jnp.float32)      # (N, E)
    agg = jnp.dot(adj_mod.astype(jnp.bfloat16),
                  (support * dis).astype(jnp.bfloat16),
                  preferred_element_type=jnp.float32)          # (N, E)
    y = agg * dis + b_ref[...]

    @pl.when(layer < n_layers - 1)
    def _hidden():
        # BatchNorm1d with batch statistics (PyTorch train-mode BN, biased
        # variance, eps=1e-5).  Two-pass centered variance for stability.
        mean = jnp.mean(y, axis=0, keepdims=True)
        var = jnp.mean((y - mean) * (y - mean), axis=0, keepdims=True)
        y_hat = (y - mean) * jax.lax.rsqrt(var + 1e-5)
        y_hat = y_hat * bnw_ref[...] + bnb_ref[...]
        act = jnp.where(y_hat >= 0.0, y_hat, 0.01 * y_hat)     # leaky_relu(0.01)
        emb_scr[...] = emb + act                               # residual, carried to next layer
        # TODO(synk): dropout for is_training=True would go here
        # (pltpu.prng_seed + pltpu.stateful_bernoulli); eval path only.

    @pl.when(layer == n_layers - 1)
    def _final():
        out_ref[...] = y.astype(out_ref.dtype)                 # final GCN layer: no BN/act/residual


def _vmem_limit_bytes(n, e):
    """Explicit scoped-VMEM budget from the actual (double-buffered) block sizes."""
    def pad(x, m):
        return ((x + m - 1) // m) * m
    n_s, n_l, e_l = pad(n, 8), pad(n, 128), pad(e, 128)
    need = 0
    need += 2 * 2 * (n_s * n_l * 2)        # adj + S bf16 blocks, double-buffered
    need += 2 * (n_s * e_l * 4)            # features f32
    need += 2 * (pad(e, 16) * e_l * 2)     # W bf16 (per-layer block)
    need += 2 * 3 * (8 * e_l * 4)          # b / bn_w / bn_b
    need += 2 * (n_s * e_l * 4)            # output block f32
    need += n_s * e_l * 4 + 2 * n_s * 128 * 4   # emb + deg0/deg1 scratch
    # 25% margin for compiler temporaries; cap under v7x's 64 MiB physical VMEM.
    # TODO(synk): for N large enough that adj+S do not fit VMEM, row-tile the
    # aggregation and switch BN to a two-pass (stats then normalize) scheme.
    return int(min(max(need * 5 // 4 + (2 << 20), 16 << 20), 56 << 20))


def sfc_gcn_forward(features, adj_stack, S_stack, params, is_training=False):
    """Full SFC_GCN forward on G stacked graphs.

    features : (N, E) f32
    adj_stack, S_stack : (G, N, N), stacked in GRAPH_KEYS order
    params : stacked per-layer params (see init_params)
    Returns (G, N, E) f32 embeddings (index 0..3 = "n","poi","s","d").
    """
    G, N, _ = adj_stack.shape
    _, E = features.shape
    L = params["W"].shape[0]

    feats = features.astype(jnp.float32)
    adj_bf16 = adj_stack.astype(jnp.bfloat16)   # halves the dominant HBM traffic
    s_bf16 = S_stack.astype(jnp.bfloat16)
    w_bf16 = params["W"].astype(jnp.bfloat16)   # (L, E, E)
    b = params["b"].astype(jnp.float32)         # (L, 1, E)
    bn_w = params["bn_w"].astype(jnp.float32)   # (L, 1, E)  (last slot identity, unused)
    bn_b = params["bn_b"].astype(jnp.float32)   # (L, 1, E)
    gamma = params["gamma"].astype(jnp.float32) # (L,)

    grid_spec = pltpu.PrefetchScalarGridSpec(
        num_scalar_prefetch=1,                  # gamma table lands in SMEM
        grid=(G, L),
        in_specs=[
            pl.BlockSpec((N, E), lambda g, l, gam: (0, 0)),            # features (DMA'd once)
            pl.BlockSpec((None, N, N), lambda g, l, gam: (g, 0, 0)),   # adj[g], resident over l
            pl.BlockSpec((None, N, N), lambda g, l, gam: (g, 0, 0)),   # S[g],   resident over l
            pl.BlockSpec((None, E, E), lambda g, l, gam: (l, 0, 0)),   # W[l]
            pl.BlockSpec((None, 1, E), lambda g, l, gam: (l, 0, 0)),   # b[l]
            pl.BlockSpec((None, 1, E), lambda g, l, gam: (l, 0, 0)),   # bn_w[l]
            pl.BlockSpec((None, 1, E), lambda g, l, gam: (l, 0, 0)),   # bn_b[l]
        ],
        out_specs=pl.BlockSpec((None, N, E), lambda g, l, gam: (g, 0, 0)),
        scratch_shapes=[
            pltpu.VMEM((N, E), jnp.float32),    # carried embedding
            pltpu.VMEM((N, 1), jnp.float32),    # deg0
            pltpu.VMEM((N, 1), jnp.float32),    # deg1
        ],
    )

    return pl.pallas_call(
        _sfc_gcn_kernel,
        grid_spec=grid_spec,
        out_shape=jax.ShapeDtypeStruct((G, N, E), jnp.float32),
        compiler_params=pltpu.CompilerParams(
            dimension_semantics=("parallel", "arbitrary"),   # graphs across TCs, layers sequential
            vmem_limit_bytes=_vmem_limit_bytes(N, E),
        ),
    )(gamma, feats, adj_bf16, s_bf16, w_bf16, b, bn_w, bn_b)


# ----------------------------------------------------------------------------
# Parameters, adjacency construction, pure-JAX reference
# ----------------------------------------------------------------------------
def init_params(key, embedding_size, gcn_layers, gamma):
    """Stacked per-layer parameters (built once; no per-forward tiling)."""
    E = embedding_size
    a = math.sqrt(6.0 / (E + E))   # xavier_uniform bound
    W = jax.random.uniform(key, (gcn_layers, E, E), jnp.float32, minval=-a, maxval=a)
    return {
        "W": W,
        "b": jnp.zeros((gcn_layers, 1, E), jnp.float32),
        "gamma": jnp.full((gcn_layers,), gamma, jnp.float32),
        # BN exists only for the first L-1 layers; the last slot is identity
        # (weight=1, bias=0) and is never read by the kernel.
        "bn_w": jnp.ones((gcn_layers, 1, E), jnp.float32),
        "bn_b": jnp.zeros((gcn_layers, 1, E), jnp.float32),
    }


def build_adjacency(edge_index, num_nodes):
    """remove_self_loops -> add_self_loops -> symmetric binary dense adjacency."""
    e0, e1 = edge_index[0], edge_index[1]
    non_self = (e0 != e1).astype(jnp.float32)
    adj = jnp.zeros((num_nodes, num_nodes), jnp.float32)
    adj = adj.at[e0, e1].max(non_self)
    adj = adj.at[e1, e0].max(non_self)
    return jnp.maximum(adj, jnp.eye(num_nodes, dtype=jnp.float32))


def sfc_gcn_reference(features, adj_stack, S_stack, params):
    """Pure f32 JAX reference mirroring the PyTorch forward (eval mode)."""
    L = params["W"].shape[0]
    outs = []
    for g in range(adj_stack.shape[0]):
        emb = features
        for i in range(L):
            gamma = jax.nn.sigmoid(params["gamma"][i])
            adj = adj_stack[g] * (1.0 + gamma * S_stack[g])
            dis = 1.0 / jnp.sqrt(jnp.sum(adj, axis=1))
            norm_adj = adj * dis[:, None] * dis[None, :]
            y = norm_adj @ (emb @ params["W"][i]) + params["b"][i]
            if i < L - 1:
                mean = jnp.mean(y, axis=0, keepdims=True)
                var = jnp.mean((y - mean) ** 2, axis=0, keepdims=True)
                y_hat = (y - mean) / jnp.sqrt(var + 1e-5)
                y_hat = y_hat * params["bn_w"][i] + params["bn_b"][i]
                emb = emb + jnp.where(y_hat >= 0, y_hat, 0.01 * y_hat)
            else:
                emb = y
        outs.append(emb)
    return jnp.stack(outs)


# ----------------------------------------------------------------------------
# Main
# ----------------------------------------------------------------------------
if __name__ == "__main__":
    NUM_NODES = 16
    EMBEDDING_SIZE = 32
    GCN_LAYERS = 2
    GAMMA = 0.5
    NUM_EDGES = 24

    root = jax.random.PRNGKey(0)
    k_feat, k_param, k_edges, k_S = jax.random.split(root, 4)

    features = jax.random.normal(k_feat, (NUM_NODES, EMBEDDING_SIZE), jnp.float32)
    params = init_params(k_param, EMBEDDING_SIZE, GCN_LAYERS, GAMMA)

    edge_keys = jax.random.split(k_edges, len(GRAPH_KEYS))
    S_keys = jax.random.split(k_S, len(GRAPH_KEYS))
    adj_list, S_list = [], []
    for ek, sk in zip(edge_keys, S_keys):
        ei = jax.random.randint(ek, (2, NUM_EDGES), 0, NUM_NODES, jnp.int32)
        adj_list.append(build_adjacency(ei, NUM_NODES))
        S_list.append(jax.random.uniform(sk, (NUM_NODES, NUM_NODES), jnp.float32))
    adj_stack = jnp.stack(adj_list)   # (4, N, N) in GRAPH_KEYS order
    S_stack = jnp.stack(S_list)

    fwd = jax.jit(sfc_gcn_forward)
    out = fwd(features, adj_stack, S_stack, params)
    out = jax.block_until_ready(out)

    n_emb, poi_emb, s_emb, d_emb = (out[g] for g in range(len(GRAPH_KEYS)))

    assert out.shape == (len(GRAPH_KEYS), NUM_NODES, EMBEDDING_SIZE)
    assert bool(jnp.all(jnp.isfinite(out)))

    # Correctness check vs pure-f32 reference (kernel uses bf16 matmul operands
    # with f32 accumulation, so allow a small tolerance).
    ref = sfc_gcn_reference(features, adj_stack, S_stack, params)
    max_err = float(jnp.max(jnp.abs(out - ref)))
    assert bool(jnp.allclose(out, ref, rtol=1e-1, atol=1e-1)), f"max_err={max_err}"

    print("KERNEL_OK")
</pallas_src>

<mosaic_0001>
module attributes {stable_mosaic.version = 11 : i64} {
  func.func @_sfc_gcn_kernel(%arg0: i32, %arg1: i32, %arg2: memref<2xf32, #tpu.memory_space<smem>>, %arg3: memref<16x32xf32, #tpu.memory_space<vmem>>, %arg4: memref<1x16x16xbf16, #tpu.memory_space<vmem>>, %arg5: memref<1x16x16xbf16, #tpu.memory_space<vmem>>, %arg6: memref<1x32x32xbf16, #tpu.memory_space<vmem>>, %arg7: memref<1x1x32xf32, #tpu.memory_space<vmem>>, %arg8: memref<1x1x32xf32, #tpu.memory_space<vmem>>, %arg9: memref<1x1x32xf32, #tpu.memory_space<vmem>>, %arg10: memref<1x16x32xf32, #tpu.memory_space<vmem>>, %arg11: memref<16x32xf32, #tpu.memory_space<vmem>>, %arg12: memref<16x1xf32, #tpu.memory_space<vmem>>, %arg13: memref<16x1xf32, #tpu.memory_space<vmem>>) attributes {dimension_semantics = [#tpu.dimension_semantics<parallel>, #tpu.dimension_semantics<arbitrary>], iteration_bounds = array<i64: 4, 2>, scalar_prefetch = 1 : i64, scratch_operands = 3 : i64, tpu.core_type = #tpu.core_type<tc>, window_params = [{pipeline_mode = #tpu.pipeline_mode<synchronous>, transform_indices = @transform_0, window_bounds = array<i64: 16, 32>}, {transform_indices = @transform_1, window_bounds = array<i64: 1, 16, 16>}, {transform_indices = @transform_2, window_bounds = array<i64: 1, 16, 16>}, {transform_indices = @transform_3, window_bounds = array<i64: 1, 32, 32>}, {transform_indices = @transform_4, window_bounds = array<i64: 1, 1, 32>}, {transform_indices = @transform_5, window_bounds = array<i64: 1, 1, 32>}, {transform_indices = @transform_6, window_bounds = array<i64: 1, 1, 32>}, {transform_indices = @transform_7, window_bounds = array<i64: 1, 16, 32>}]} {
    %c0 = arith.constant 0 : index
    %c0_0 = arith.constant 0 : index
    %c0_1 = arith.constant 0 : index
    %0 = vector.load %arg4[%c0, %c0_0, %c0_1] : memref<1x16x16xbf16, #tpu.memory_space<vmem>>, vector<1x16x16xbf16>
    %1 = vector.shape_cast %0 : vector<1x16x16xbf16> to vector<16x16xbf16>
    %2 = arith.extf %1 : vector<16x16xbf16> to vector<16x16xf32>
    %c0_2 = arith.constant 0 : index
    %c0_3 = arith.constant 0 : index
    %c0_4 = arith.constant 0 : index
    %3 = vector.load %arg5[%c0_2, %c0_3, %c0_4] : memref<1x16x16xbf16, #tpu.memory_space<vmem>>, vector<1x16x16xbf16>
    %4 = vector.shape_cast %3 : vector<1x16x16xbf16> to vector<16x16xbf16>
    %5 = arith.extf %4 : vector<16x16xbf16> to vector<16x16xf32>
    %c0_i32 = arith.constant 0 : i32
    %6 = arith.cmpi eq, %arg1, %c0_i32 : i32
    %7 = arith.extui %6 : i1 to i32
    %c0_i32_5 = arith.constant 0 : i32
    %8 = arith.cmpi ne, %7, %c0_i32_5 : i32
    scf.if %8 {
      %c0_24 = arith.constant 0 : index
      %c0_25 = arith.constant 0 : index
      %48 = vector.load %arg3[%c0_24, %c0_25] : memref<16x32xf32, #tpu.memory_space<vmem>>, vector<16x32xf32>
      %c0_26 = arith.constant 0 : index
      %c0_27 = arith.constant 0 : index
      %49 = vector.load %arg11[%c0_26, %c0_27] : memref<16x32xf32, #tpu.memory_space<vmem>>, vector<16x32xf32>
      tpu.vector_store %arg11[%c0_26, %c0_27], %48 {strides = array<i32>} : memref<16x32xf32, #tpu.memory_space<vmem>>, vector<16x32xf32>,
      %cst_28 = arith.constant dense<0.000000e+00> : vector<16xf32>
      %50 = vector.multi_reduction <add>, %2, %cst_28 [1] : vector<16x16xf32> to vector<16xf32>
      %51 = vector.shape_cast %50 : vector<16xf32> to vector<16x1xf32>
      %c0_29 = arith.constant 0 : index
      %c0_30 = arith.constant 0 : index
      %52 = vector.load %arg12[%c0_29, %c0_30] : memref<16x1xf32, #tpu.memory_space<vmem>>, vector<16x1xf32>
      tpu.vector_store %arg12[%c0_29, %c0_30], %51 {strides = array<i32>} : memref<16x1xf32, #tpu.memory_space<vmem>>, vector<16x1xf32>,
      %53 = arith.mulf %2, %5 : vector<16x16xf32>
      %cst_31 = arith.constant dense<0.000000e+00> : vector<16xf32>
      %54 = vector.multi_reduction <add>, %53, %cst_31 [1] : vector<16x16xf32> to vector<16xf32>
      %55 = vector.shape_cast %54 : vector<16xf32> to vector<16x1xf32>
      %c0_32 = arith.constant 0 : index
      %c0_33 = arith.constant 0 : index
      %56 = vector.load %arg13[%c0_32, %c0_33] : memref<16x1xf32, #tpu.memory_space<vmem>>, vector<16x1xf32>
      tpu.vector_store %arg13[%c0_32, %c0_33], %55 {strides = array<i32>} : memref<16x1xf32, #tpu.memory_space<vmem>>, vector<16x1xf32>,
    } else {
    }
    %9 = arith.index_cast %arg1 : i32 to index
    %10 = memref.load %arg2[%9] : memref<2xf32, #tpu.memory_space<smem>>
    %11 = arith.negf %10 : f32
    %12 = math.exp %11 : f32
    %cst = arith.constant 1.000000e+00 : f32
    %13 = arith.addf %cst, %12 : f32
    %14 = arith.divf %cst, %13 : f32
    %c0_6 = arith.constant 0 : index
    %c0_7 = arith.constant 0 : index
    %15 = vector.load %arg11[%c0_6, %c0_7] : memref<16x32xf32, #tpu.memory_space<vmem>>, vector<16x32xf32>
    %16 = vector.broadcast %14 : f32 to vector<16x16xf32>
    %17 = arith.mulf %16, %5 : vector<16x16xf32>
    %cst_8 = arith.constant 1.000000e+00 : f32
    %18 = vector.broadcast %cst_8 : f32 to vector<16x16xf32>
    %19 = arith.addf %18, %17 : vector<16x16xf32>
    %20 = arith.mulf %2, %19 : vector<16x16xf32>
    %c0_9 = arith.constant 0 : index
    %c0_10 = arith.constant 0 : index
    %21 = vector.load %arg12[%c0_9, %c0_10] : memref<16x1xf32, #tpu.memory_space<vmem>>, vector<16x1xf32>
    %c0_11 = arith.constant 0 : index
    %c0_12 = arith.constant 0 : index
    %22 = vector.load %arg13[%c0_11, %c0_12] : memref<16x1xf32, #tpu.memory_space<vmem>>, vector<16x1xf32>
    %23 = vector.broadcast %14 : f32 to vector<16x1xf32>
    %24 = arith.mulf %23, %22 : vector<16x1xf32>
    %25 = arith.addf %21, %24 : vector<16x1xf32>
    %26 = math.rsqrt %25 : vector<16x1xf32>
    %27 = arith.truncf %15 : vector<16x32xf32> to vector<16x32xbf16>
    %c0_13 = arith.constant 0 : index
    %c0_14 = arith.constant 0 : index
    %c0_15 = arith.constant 0 : index
    %28 = vector.load %arg6[%c0_13, %c0_14, %c0_15] : memref<1x32x32xbf16, #tpu.memory_space<vmem>>, vector<1x32x32xbf16>
    %29 = vector.shape_cast %28 : vector<1x32x32xbf16> to vector<32x32xbf16>
    %cst_16 = arith.constant dense<0.000000e+00> : vector<16x32xf32>
    %30 = tpu.matmul %27, %29, %cst_16 {dimension_numbers = #tpu.dot_dimension_numbers<[1], [0], [0], [1], [0, 0, 1, 1], [], []>} : vector<16x32xbf16>, vector<32x32xbf16>, vector<16x32xf32> -> vector<16x32xf32>
    %31 = arith.truncf %20 : vector<16x16xf32> to vector<16x16xbf16>
    %32 = vector.broadcast %26 : vector<16x1xf32> to vector<16x32xf32>
    %33 = arith.mulf %30, %32 : vector<16x32xf32>
    %34 = arith.truncf %33 : vector<16x32xf32> to vector<16x32xbf16>
    %cst_17 = arith.constant dense<0.000000e+00> : vector<16x32xf32>
    %35 = tpu.matmul %31, %34, %cst_17 {dimension_numbers = #tpu.dot_dimension_numbers<[1], [0], [0], [1], [0, 0, 1, 1], [], []>} : vector<16x16xbf16>, vector<16x32xbf16>, vector<16x32xf32> -> vector<16x32xf32>
    %36 = vector.broadcast %26 : vector<16x1xf32> to vector<16x32xf32>
    %37 = arith.mulf %35, %36 : vector<16x32xf32>
    %c0_18 = arith.constant 0 : index
    %c0_19 = arith.constant 0 : index
    %c0_20 = arith.constant 0 : index
    %38 = vector.load %arg7[%c0_18, %c0_19, %c0_20] : memref<1x1x32xf32, #tpu.memory_space<vmem>>, vector<1x1x32xf32>
    %39 = vector.shape_cast %38 : vector<1x1x32xf32> to vector<1x32xf32>
    %40 = vector.broadcast %39 : vector<1x32xf32> to vector<16x32xf32>
    %41 = arith.addf %37, %40 : vector<16x32xf32>
    %c1_i32 = arith.constant 1 : i32
    %42 = arith.cmpi slt, %arg1, %c1_i32 : i32
    %43 = arith.extui %42 : i1 to i32
    %c0_i32_21 = arith.constant 0 : i32
    %44 = arith.cmpi ne, %43, %c0_i32_21 : i32
    scf.if %44 {
      %cst_24 = arith.constant dense<0.000000e+00> : vector<32xf32>
      %48 = vector.multi_reduction <add>, %41, %cst_24 [0] : vector<16x32xf32> to vector<32xf32>
      %49 = vector.shape_cast %48 : vector<32xf32> to vector<1x32xf32>
      %cst_25 = arith.constant 1.600000e+01 : f32
      %50 = vector.broadcast %cst_25 : f32 to vector<1x32xf32>
      %51 = arith.divf %49, %50 : vector<1x32xf32>
      %52 = vector.broadcast %51 : vector<1x32xf32> to vector<16x32xf32>
      %53 = arith.subf %41, %52 : vector<16x32xf32>
      %54 = vector.broadcast %51 : vector<1x32xf32> to vector<16x32xf32>
      %55 = arith.subf %41, %54 : vector<16x32xf32>
      %56 = arith.mulf %53, %55 : vector<16x32xf32>
      %cst_26 = arith.constant dense<0.000000e+00> : vector<32xf32>
      %57 = vector.multi_reduction <add>, %56, %cst_26 [0] : vector<16x32xf32> to vector<32xf32>
      %58 = vector.shape_cast %57 : vector<32xf32> to vector<1x32xf32>
      %cst_27 = arith.constant 1.600000e+01 : f32
      %59 = vector.broadcast %cst_27 : f32 to vector<1x32xf32>
      %60 = arith.divf %58, %59 : vector<1x32xf32>
      %61 = vector.broadcast %51 : vector<1x32xf32> to vector<16x32xf32>
      %62 = arith.subf %41, %61 : vector<16x32xf32>
      %cst_28 = arith.constant 9.99999974E-6 : f32
      %63 = vector.broadcast %cst_28 : f32 to vector<1x32xf32>
      %64 = arith.addf %60, %63 : vector<1x32xf32>
      %65 = math.rsqrt %64 : vector<1x32xf32>
      %66 = vector.broadcast %65 : vector<1x32xf32> to vector<16x32xf32>
      %67 = arith.mulf %62, %66 : vector<16x32xf32>
      %c0_29 = arith.constant 0 : index
      %c0_30 = arith.constant 0 : index
      %c0_31 = arith.constant 0 : index
      %68 = vector.load %arg8[%c0_29, %c0_30, %c0_31] : memref<1x1x32xf32, #tpu.memory_space<vmem>>, vector<1x1x32xf32>
      %69 = vector.shape_cast %68 : vector<1x1x32xf32> to vector<1x32xf32>
      %70 = vector.broadcast %69 : vector<1x32xf32> to vector<16x32xf32>
      %71 = arith.mulf %67, %70 : vector<16x32xf32>
      %c0_32 = arith.constant 0 : index
      %c0_33 = arith.constant 0 : index
      %c0_34 = arith.constant 0 : index
      %72 = vector.load %arg9[%c0_32, %c0_33, %c0_34] : memref<1x1x32xf32, #tpu.memory_space<vmem>>, vector<1x1x32xf32>
      %73 = vector.shape_cast %72 : vector<1x1x32xf32> to vector<1x32xf32>
      %74 = vector.broadcast %73 : vector<1x32xf32> to vector<16x32xf32>
      %75 = arith.addf %71, %74 : vector<16x32xf32>
      %cst_35 = arith.constant 0.000000e+00 : f32
      %76 = vector.broadcast %cst_35 : f32 to vector<16x32xf32>
      %77 = arith.cmpf oge, %75, %76 : vector<16x32xf32>
      %cst_36 = arith.constant 0.00999999977 : f32
      %78 = vector.broadcast %cst_36 : f32 to vector<16x32xf32>
      %79 = arith.mulf %78, %75 : vector<16x32xf32>
      %80 = arith.select %77, %75, %79 : vector<16x32xi1>, vector<16x32xf32>
      %81 = arith.addf %15, %80 : vector<16x32xf32>
      %c0_37 = arith.constant 0 : index
      %c0_38 = arith.constant 0 : index
      %82 = vector.load %arg11[%c0_37, %c0_38] : memref<16x32xf32, #tpu.memory_space<vmem>>, vector<16x32xf32>
      tpu.vector_store %arg11[%c0_37, %c0_38], %81 {strides = array<i32>} : memref<16x32xf32, #tpu.memory_space<vmem>>, vector<16x32xf32>,
    } else {
    }
    %c1_i32_22 = arith.constant 1 : i32
    %45 = arith.cmpi eq, %arg1, %c1_i32_22 : i32
    %46 = arith.extui %45 : i1 to i32
    %c0_i32_23 = arith.constant 0 : i32
    %47 = arith.cmpi ne, %46, %c0_i32_23 : i32
    scf.if %47 {
      %c0_24 = arith.constant 0 : index
      %c0_25 = arith.constant 0 : index
      %c0_26 = arith.constant 0 : index
      %48 = vector.load %arg10[%c0_24, %c0_25, %c0_26] : memref<1x16x32xf32, #tpu.memory_space<vmem>>, vector<1x16x32xf32>
      %49 = vector.shape_cast %48 : vector<1x16x32xf32> to vector<16x32xf32>
      %50 = vector.shape_cast %41 : vector<16x32xf32> to vector<1x16x32xf32>
      tpu.vector_store %arg10[%c0_24, %c0_25, %c0_26], %50 {strides = array<i32>} : memref<1x16x32xf32, #tpu.memory_space<vmem>>, vector<1x16x32xf32>,
    } else {
    }
    return
  }
  func.func @transform_0(%arg0: i32, %arg1: i32, %arg2: memref<2xf32, #tpu.memory_space<smem>>) -> (i32, i32) {
    %c0_i32 = arith.constant 0 : i32
    %c0_i32_0 = arith.constant 0 : i32
    %c0_i32_1 = arith.constant 0 : i32
    return %c0_i32, %c0_i32_0 : i32, i32
  }
  func.func @transform_1(%arg0: i32, %arg1: i32, %arg2: memref<2xf32, #tpu.memory_space<smem>>) -> (i32, i32, i32) {
    %c0_i32 = arith.constant 0 : i32
    %c0_i32_0 = arith.constant 0 : i32
    %c0_i32_1 = arith.constant 0 : i32
    return %arg0, %c0_i32, %c0_i32_0 : i32, i32, i32
  }
  func.func @transform_2(%arg0: i32, %arg1: i32, %arg2: memref<2xf32, #tpu.memory_space<smem>>) -> (i32, i32, i32) {
    %c0_i32 = arith.constant 0 : i32
    %c0_i32_0 = arith.constant 0 : i32
    %c0_i32_1 = arith.constant 0 : i32
    return %arg0, %c0_i32, %c0_i32_0 : i32, i32, i32
  }
  func.func @transform_3(%arg0: i32, %arg1: i32, %arg2: memref<2xf32, #tpu.memory_space<smem>>) -> (i32, i32, i32) {
    %c0_i32 = arith.constant 0 : i32
    %c0_i32_0 = arith.constant 0 : i32
    %c0_i32_1 = arith.constant 0 : i32
    return %arg1, %c0_i32, %c0_i32_0 : i32, i32, i32
  }
  func.func @transform_4(%arg0: i32, %arg1: i32, %arg2: memref<2xf32, #tpu.memory_space<smem>>) -> (i32, i32, i32) {
    %c0_i32 = arith.constant 0 : i32
    %c0_i32_0 = arith.constant 0 : i32
    %c0_i32_1 = arith.constant 0 : i32
    return %arg1, %c0_i32, %c0_i32_0 : i32, i32, i32
  }
  func.func @transform_5(%arg0: i32, %arg1: i32, %arg2: memref<2xf32, #tpu.memory_space<smem>>) -> (i32, i32, i32) {
    %c0_i32 = arith.constant 0 : i32
    %c0_i32_0 = arith.constant 0 : i32
    %c0_i32_1 = arith.constant 0 : i32
    return %arg1, %c0_i32, %c0_i32_0 : i32, i32, i32
  }
  func.func @transform_6(%arg0: i32, %arg1: i32, %arg2: memref<2xf32, #tpu.memory_space<smem>>) -> (i32, i32, i32) {
    %c0_i32 = arith.constant 0 : i32
    %c0_i32_0 = arith.constant 0 : i32
    %c0_i32_1 = arith.constant 0 : i32
    return %arg1, %c0_i32, %c0_i32_0 : i32, i32, i32
  }
  func.func @transform_7(%arg0: i32, %arg1: i32, %arg2: memref<2xf32, #tpu.memory_space<smem>>) -> (i32, i32, i32) {
    %c0_i32 = arith.constant 0 : i32
    %c0_i32_0 = arith.constant 0 : i32
    %c0_i32_1 = arith.constant 0 : i32
    return %arg0, %c0_i32, %c0_i32_0 : i32, i32, i32
  }
}

</mosaic_0001>

<bundles_post_ra>
// kernel: sfc_gcn_forward.1
= control target key start
LH: loop header
LB: loop body
LE: loop exit
PB: predicated region body
PF: predicated region fallthrough
CT: control target
= control target key end

     0   :  { %s1334_s0 = inlined_call_operand.vmem [shape: f32[2], index: 0, kind: input, shape index: {}]   ;;  %s1335_s1 = inlined_call_operand.vmem [shape: f32[16,32], index: 1, kind: input, shape index: {}]   ;;  %s1336_s2 = inlined_call_operand.vmem [shape: bf16[4,16,16], index: 2, kind: input, shape index: {}]   ;;  %s1337_s3 = inlined_call_operand.vmem [shape: bf16[4,16,16], index: 3, kind: input, shape index: {}]   ;;  %s1338_s4 = inlined_call_operand.vmem [shape: bf16[2,32,32], index: 4, kind: input, shape index: {}]   ;;  %s1339_s5 = inlined_call_operand.vmem [shape: f32[2,1,32], index: 5, kind: input, shape index: {}]   ;;  %s1340_s6 = inlined_call_operand.vmem [shape: f32[2,1,32], index: 6, kind: input, shape index: {}]   ;;  %s1341_s7 = inlined_call_operand.vmem [shape: f32[2,1,32], index: 7, kind: input, shape index: {}]   ;;  %s1342_s8 = inlined_call_operand.hbm [shape: f32[4,16,32], index: 8, kind: output, shape index: {}]  }
   0x1   :  { %s13_s29 = sshll.u32 %s1334_s0, 4  ;;  %s14_s29 = int_to_ptr.vmem [resolvable:$true] %s13_s29 }
   0x2   :  { %s934_s30 = scalar_lea.vmem %s14_s29, 16  ;;  %p939_p1 = scmp.lt.s32.totalorder %s14_s29, %s14_s29 }
   0x3   :  { %p935_p0 = scmp.ne.s32.totalorder %s14_s29, %s934_s30  ;;  %p940_p2 = scmp.lt.s32.totalorder %s934_s30, %s934_s30 }
   0x5   :  { %p941_p3 = por %p940_p2, %p939_p1 }
   0x7   :  { %p942_p4 = pnand %p941_p3, %p935_p0 }
   0x9   :  { %945 = shalt.err (!%p942_p4)  }
   0xa   :  { %s1044_s9 = smov [#allocation6]  }
   0xb   :  { %16 = dma.vmem_to_smem %s14_s29, 16, %s1044_s9, [#allocation5] }
   0xc   :  { %1006 = dma.done.wait [#allocation5], 16 }
   0xd   :  { %1007 = vsyncadd [#allocation5], 4294967280 }
   0xe   :  { %18 = sfence }
   0xf   :  { %19 = vsyncpa [#allocation8], 0 }
  0x10   :  { %21 = vsyncpa [#allocation8 + $0x1], 0  ;;  %s1099_s10 = smov 0   ;;  %s1101_s11 = smov 0  }
  0x11   :  { %s1103_s0 = smov 0   ;;  %s1105_s12 = smov 0  }
  0x12   :  { %s1107_s13 = smov 0   ;;  %s1109_s14 = smov 0  }
  0x13   :  { %s1111_s15 = smov 0   ;;  %s1113_s16 = smov 0  }
  0x14 LB: > { %1349 = sst [smem:[#allocation11_spill]] %s1022_s0  ;;  %s782_s17 = sadd.s32 4294967295, %s1042_s16   ;;  %s1042_s16 = sphi %s1113_s16, %s27_s16   ;;  %s1038_s15 = sphi %s1111_s15, %s1365_s15   ;;  %s1034_s14 = sphi %s1109_s14, %s1364_s14   ;;  %s1030_s13 = sphi %s1107_s13, %s1363_s13   ;;  %s1026_s12 = sphi %s1105_s12, %s1368_s12   ;;  %s1022_s0 = sphi %s1103_s0, %s1361_s0   ;;  %s1018_s11 = sphi %s1101_s11, %s1367_s11   ;;  %s1014_s10 = sphi %s1099_s10, %s1366_s10  }
  0x15   : > { %1350 = sst [smem:[#allocation12_spill]] %s1034_s14  ;;  %s783_s18 = sadd.s32 4294967294, %s1042_s16  }
  0x16   : > { %1351 = sst [smem:[#allocation13_spill]] %s1038_s15  ;;  %s36_s19 = sadd.s32 1, %s1034_s14 }
  0x17   : > { %p37_p5 = scmp.ge.s32.totalorder %s36_s19, 2  ;;  %s39_s20 = sadd.s32 1, %s1038_s15 }
  0x18   : > { %p233_p6 = scmp.ne.s32.totalorder %s1022_s0, %s1018_s11  ;;  %p234_p7 = scmp.eq.s32.totalorder %s782_s17, 7 }
  0x19   : > { %s1370_s19 = smov (%p37_p5, %s36_s19), 0  ;;  %s1372_s20 = smov (!%p37_p5, %s39_s20), %s1038_s15 }
  0x1a   : > { %1352 = sst [smem:[#allocation14_spill]] %s1370_s19  ;;  %p1148_p8 = por %p234_p7, %p233_p6 }
  0x1b   : > { %p239_p9 = scmp.ne.s32.totalorder %s1018_s11, %s1014_s10  ;;  %p41_p10 = scmp.ge.s32.totalorder %s1372_s20, 4 }
  0x1c   : > { %p240_p11 = scmp.eq.s32.totalorder %s783_s18, 7  ;;  %p786_p12 = scmp.ge.s32.totalorder %s1042_s16, 1 }
  0x1d   : > { %p303_p13 = scmp.lt.s32.totalorder %s1042_s16, 9  ;;  %s1374_s20 = smov (%p41_p10, %s1372_s20), 0 }
  0x1e   : > { %1354 = sst [smem:[#allocation15_spill]] %s1374_s20  ;;  %p1158_p0 = por %p240_p11, %p239_p9 }
  0x1f   : > { %p304_p1 = pnand %p786_p12, %p303_p13  ;;  %s220_s23 = ssub.s32 %s1038_s15, %s1374_s20 }
  0x20   : > { %s1355_s22 = scalar_select %p1158_p0, 1, 0 }
  0x21   : > { %s223_s24 = sadd.s32 1, %s1022_s0  ;;  %p221_p2 = scmp.eq.s32.totalorder %s220_s23, 0 }
  0x22   : > { %1356 = sst [smem:[#allocation16_spill]] %s1355_s22  ;;  %307 = sbr.rel (%p304_p1) target bundleno = 805 (0x325), region = 48 }
  0x23   : > { %s1166_s25 = scalar_select %p221_p2, %s1022_s0, %s223_s24  }
  0x24   : > { %s1345_s26 = sand.u32 (!%p304_p1), 1, %s1018_s11   ;;  %p354_p3 = scmp.lt.s32.totalorder (!%p304_p1), %s1030_s13, 3 }
  0x25   : > { %1357 = sst [smem:[#allocation17_spill]] %s1166_s25  ;;  %s787_s27 = sshll.u32 (!%p304_p1), %s1345_s26, 4 }
  0x26   : > { %p364_p4 = scmp.lt.s32.totalorder (!%p304_p1), %s1026_s12, 1  ;;  %p794_p5 = scmp.ne.s32.totalorder (!%p304_p1), %s1026_s12, 0 }
  0x29   : > { %s355_s28 = scalar_select %p354_p3, %s1030_s13, 3 }
  0x2a   : > { %s1175_s29 = scalar_select %p364_p4, %s1026_s12, 1 }
  0x2b   : > { %s809_s30 = sshll.u32 %s355_s28, 3  ;;  %390 = sbr.rel (%p794_p5) target bundleno = 199 (0xc7), region = 52  ;;  %vm396_vm0 = vcmask (!%p794_p5), 130048   ;;  %v391_v12 = vld [vmem:[%s1335_s1] sm:$0xff] (!%p794_p5)  ;;  %v392_v13 = vld [vmem:[%s1335_s1 + $0x8] sm:$0xff] (!%p794_p5)  ;;  %vm393_vm1 = vcmask (!%p794_p5), 261120  }
  0x2c   : > { %s358_s18 = scalar_lea.vmem %s1336_s2, %s809_s30  ;;  %s363_s20 = scalar_lea.vmem %s1337_s3, %s809_s30  ;;  %394 = vst.msk [vmem:[#allocation2] sm:$0xff] (!%p794_p5), %vm393_vm1, %v391_v12  ;;  %395 = vst.msk [vmem:[#allocation2 + $0x8] sm:$0xff] (!%p794_p5), %vm393_vm1, %v392_v13  ;;  %vm403_vm2 = vcmask (!%p794_p5), 7168  }
  0x2d   : > { %s811_s19 = sshll.u32 %s1175_s29, 4  ;;  %s371_s14 = scalar_lea.vmem %s1339_s5, %s1175_s29  ;;  %v814_v0 = vld [vmem:[%s358_s18] sm:$0xff]  }
  0x2e   : > { %v1188_v1 = vld [vmem:[%s363_s20] sm:$0xff]   ;;  %s1193_s28 = scalar_lea.vmem %s1338_s4, %s811_s19  ;;  %s374_s17 = scalar_lea.vmem %s1340_s6, %s1175_s29  ;;  %v1199_v2 = vunpack.c.l.bf16 %v814_v0  ;;  %v1201_v3 = vunpack.c.h.bf16 %v814_v0 }
  0x2f   : > { %v819_v4 = vunpack.c.l.bf16 %v1188_v1  ;;  %v820_v5 = vunpack.c.h.bf16 %v1188_v1  ;;  %s377_s26 = scalar_lea.vmem %s1341_s7, %s1175_s29  ;;  %s1209_s30 = scalar_lea.vmem [#allocation7], %s787_s27 }
  0x30   : > { %v397_v8 = vsel (!%p794_p5), %vm396_vm0, %v1199_v2, 0.0  ;;  %v400_v10 = vsel (!%p794_p5), %vm396_vm0, %v1201_v3, 0.0 }
  0x31   : > { %v406_v6 = vmul.f32 (!%p794_p5), %v819_v4, %v1199_v2  ;;  %v407_v7 = vmul.f32 (!%p794_p5), %v820_v5, %v1201_v3  ;;  %398 = vadd.xlane.f32.xlu0 (!%p794_p5), %v397_v8 }
  0x33   : > { %v408_v9 = vsel %vm396_vm0, %v406_v6, 0.0  ;;  %v411_v11 = vsel %vm396_vm0, %v407_v7, 0.0 }
  0x34   : > { %409 = vadd.xlane.f32.xlu1 %v408_v9 }
  0x35   : > { %401 = vadd.xlane.f32.xlu0 %v400_v10 }
  0x38   : > { %412 = vadd.xlane.f32.xlu1 %v411_v11 }
  0xbe   : > { %v399_v14 = vpop.xlane.xlu0 %398 }
  0xbf   : > { %404 = vst.msk [vmem:[#allocation3] sm:$0xff] %vm403_vm2, %v399_v14 }
  0xc1   : > { %v410_v15 = vpop.xlane.xlu1 %409 }
  0xc2   : > { %414 = vst.msk [vmem:[#allocation4] sm:$0xff] %vm403_vm2, %v410_v15  ;;  %v402_v16 = vpop.xlane.xlu0 %401 }
  0xc3   : > { %405 = vst.msk [vmem:[#allocation3 + $0x8] sm:$0xff] %vm403_vm2, %v402_v16 }
  0xc5   : > { %v413_v17 = vpop.xlane.xlu1 %412 }
  0xc6   : > { %415 = vst.msk [vmem:[#allocation4 + $0x8] sm:$0xff] %vm403_vm2, %v413_v17 }
  0xc7 PF: > { %s416_s27 = sld [smem:[#allocation6 + %s1026_s12]]  ;;  %v1045_v18 = vmov 0.0   ;;  %v922_v19 = vld [vmem:[%s1193_s28] sm:$0xff]   ;;  %vm1046_vm3 = vmmov 0   ;;  %v923_v20 = vld [vmem:[%s1193_s28 + $0x8] sm:$0xff]   ;;  %vm462_vm4 = vcmask 261120  }
  0xc8   : > { %826 = vmatprep.subr.bf16.mxu0 %v1045_v18  ;;  %834 = vmatprep.subr.bf16.mxu1 %v1045_v18  ;;  %v1229_v21 = vld [vmem:[#allocation2] sm:$0xff]  ;;  %v1231_v22 = vld [vmem:[#allocation2 + $0x8] sm:$0xff]  ;;  %v1047_v26 = vmov 0   ;;  %v435_v33 = vld [vmem:[#allocation3] sm:$0xff]  ;;  %vm521_vm5 = vcmask 130048   ;;  %p800_p6 = scmp.ge.s32.totalorder %s1026_s12, 1 }
  0xc9   : > { %830 = vmatprep.mubr.msk.bf16.mxu0 %vm1046_vm3, %v1045_v18  ;;  %836 = vmatprep.mubr.msk.bf16.mxu1 %vm1046_vm3, %v1045_v18  ;;  %v445_v23 = vpack.c.bf16 %v1231_v22, %v1229_v21  ;;  %v437_v30 = vld [vmem:[#allocation4] sm:$0xff] }
  0xca   : > { %827 = vmatpush3.bf16.msra.mxu0 %v922_v19  ;;  %921 = vset.pattern.permute.xlu0 %v1047_v26  ;;  %v436_v36 = vld [vmem:[#allocation3 + $0x8] sm:$0xff]  ;;  %v799_v58 = vld [vmem:[%s371_s14] ss:$0 sm:$0xff] }
  0xcb   : > { %828 = vmatprep.subr.bf16.mxu0 %v1045_v18 }
  0xcd   : > { %s417_s18 = sxor.u32 2147483648, %s416_s27  ;;  %v438_v31 = vld [vmem:[#allocation4 + $0x8] sm:$0xff] }
  0xce   : > { %v418_v24 = vstv %s417_s18  ;;  %829 = vmatpush3.bf16.msra.mxu0 %v923_v20 }
  0xcf   : > { %v419_v25 = vmul.f32 1.442695, %v418_v24 }
  0xd1   : > { %924 = vpow2.f32 %v419_v25  ;;  %831 = vmatmul.mubr.msk.bf16.vlgmr.msra.gmra.mrb[0].mxu0 %vm462_vm4, %v445_v23 }
  0xdb   : > { %v925_v27 = vpop.eup %924 }
  0xdc   : > { %840 = vpush %v925_v27 }
 0x10d   : > { %s841_s23 = spop %840 }
 0x10e   : > { %s422_s24 = sadd.f32 1.0, %s841_s23 }
 0x110   : > { %v423_v28 = vstv %s422_s24 }
 0x111   : > { %926 = vrcp.f32 %v423_v28 }
 0x11b   : > { %v927_v29 = vpop.eup %926 }
 0x11c   : > { %842 = vpush %v927_v29 }
 0x14d   : > { %s843_s28 = spop %842 }
 0x14e   : > { %v428_v32 = vstv %s843_s28 }
 0x14f   : > { %v439_v34 = vmul.f32 %v437_v30, %v428_v32  ;;  %v440_v35 = vmul.f32 %v438_v31, %v428_v32  ;;  %v429_v45 = vmul.f32 %v819_v4, %v428_v32  ;;  %v430_v46 = vmul.f32 %v820_v5, %v428_v32  ;;  %v801_v30 = vld [vmem:[%s374_s17] ss:$0 sm:$0xff] (!%p800_p6) }
 0x151   : > { %v441_v37 = vadd.f32 %v439_v34, %v435_v33  ;;  %v442_v38 = vadd.f32 %v440_v35, %v436_v36  ;;  %v431_v48 = vadd.f32 1.0, %v429_v45  ;;  %v432_v49 = vadd.f32 1.0, %v430_v46  ;;  %v802_v33 = vld [vmem:[%s377_s26] ss:$0 sm:$0xff] (!%p800_p6) }
 0x153   : > { %928 = vrsqrt.f32 %v441_v37  ;;  %v433_v53 = vmul.f32 %v1199_v2, %v431_v48  ;;  %v434_v54 = vmul.f32 %v1201_v3, %v432_v49 }
 0x154   : > { %930 = vrsqrt.f32 %v442_v38 }
 0x155   : > { %v507_v56 = vpack.c.bf16 %v434_v54, %v433_v53 }
 0x15d   : > { %v929_v39 = vpop.eup %928 }
 0x15e   : > { %510 = vperm.xlu0 %921, %v929_v39   ;;  %v931_v40 = vpop.eup %930 }
 0x162   : > { %515 = vperm.xlu0 %921, %v931_v40  }
 0x1a4   : > { %v500_v41 = vpop.f32.mrb[0].mxu0 }
 0x1a5   : > { %v832_v42 = vpop.f32.mrb[1].mxu0 }
 0x1a6   : > { %v503_v43 = vpop.f32.mrb[2].mxu0 }
 0x1a7   : > { %v833_v44 = vpop.f32.mrb[3].mxu0 }
 0x1dd   : > { %v511_v47 = vpop.permute.xlu0 %510 }
 0x1de   : > { %v518_v51 = vmul.f32 %v511_v47, %v500_v41 }
 0x1e1   : > { %v516_v50 = vpop.permute.xlu0 %515 }
 0x1e2   : > { %v519_v52 = vmul.f32 %v516_v50, %v503_v43 }
 0x1e4   : > { %v520_v55 = vpack.c.bf16 %v519_v52, %v518_v51 }
 0x1e6   : > { %835 = vmatpush3.bf16.msra.mxu1 %v520_v55 }
 0x1e9   : > { %837 = vmatmul.mubr.msk.bf16.vlgmr.msra.gmra.mrb[0].mxu1 %vm521_vm5, %v507_v56 }
 0x2bb   : > { %580 = sbr.rel (%p800_p6) target bundleno = 770 (0x302), region = 56 }
 0x2bc   : > { %v559_v57 = vpop.f32.mrb[0].mxu1 }
 0x2bd   : > { %v566_v59 = vmul.f32 %v559_v57, %v511_v47  ;;  %v838_v60 = vpop.f32.mrb[1].mxu1 }
 0x2be   : > { %v562_v61 = vpop.f32.mrb[2].mxu1 }
 0x2bf   : > { %v575_v62 = vadd.f32 %v799_v58, %v566_v59  ;;  %v567_v63 = vmul.f32 %v562_v61, %v516_v50  ;;  %v839_v0 = vpop.f32.mrb[3].mxu1 }
 0x2c1   : > { %v576_v1 = vadd.f32 %v799_v58, %v567_v63  ;;  %v581_v2 = vsel (!%p800_p6), %vm462_vm4, %v575_v62, 0.0 }
 0x2c3   : > { %v582_v3 = vsel %vm462_vm4, %v576_v1, 0.0 }
 0x2c4   : > { %v583_v4 = vadd.f32 %v582_v3, %v581_v2 }
 0x2c6   : > { %v584_v5 = vrot.slane %v583_v4, 4 }
 0x2c8   : > { %v585_v6 = vadd.f32 %v584_v5, %v583_v4 }
 0x2ca   : > { %v586_v7 = vrot.slane %v585_v6, 2 }
 0x2cc   : > { %v587_v8 = vadd.f32 %v586_v7, %v585_v6 }
 0x2ce   : > { %v588_v9 = vrot.slane %v587_v8, 1 }
 0x2d0   : > { %v589_v10 = vadd.f32 %v588_v9, %v587_v8 }
 0x2d2   : > { %v591_v11 = vmul.f32 0.0625, %v589_v10 }
 0x2d4   : > { %v592_v12 = vsub.f32 %v575_v62, %v591_v11  ;;  %v593_v13 = vsub.f32 %v576_v1, %v591_v11 }
 0x2d6   : > { %v594_v14 = vmul.f32 %v592_v12, %v592_v12  ;;  %v595_v15 = vmul.f32 %v593_v13, %v593_v13 }
 0x2d8   : > { %v596_v16 = vsel %vm462_vm4, %v594_v14, 0.0  ;;  %v597_v17 = vsel %vm462_vm4, %v595_v15, 0.0 }
 0x2d9   : > { %v598_v18 = vadd.f32 %v597_v17, %v596_v16 }
 0x2db   : > { %v599_v19 = vrot.slane %v598_v18, 4 }
 0x2dd   : > { %v600_v20 = vadd.f32 %v599_v19, %v598_v18 }
 0x2df   : > { %v601_v23 = vrot.slane %v600_v20, 2 }
 0x2e1   : > { %v602_v24 = vadd.f32 %v601_v23, %v600_v20 }
 0x2e3   : > { %v603_v25 = vrot.slane %v602_v24, 1 }
 0x2e5   : > { %v604_v26 = vadd.f32 %v603_v25, %v602_v24 }
 0x2e7   : > { %v605_v27 = vmul.f32 0.0625, %v604_v26 }
 0x2e9   : > { %v606_v28 = vadd.f32 1e-05, %v605_v27 }
 0x2eb   : > { %932 = vrsqrt.f32 %v606_v28 }
 0x2f5   : > { %v933_v29 = vpop.eup %932 }
 0x2f6   : > { %v608_v31 = vmul.f32 %v933_v29, %v592_v12  ;;  %v609_v32 = vmul.f32 %v933_v29, %v593_v13 }
 0x2f8   : > { %v617_v34 = vmul.f32 %v801_v30, %v608_v31  ;;  %v618_v35 = vmul.f32 %v801_v30, %v609_v32 }
 0x2fa   : > { %v626_v36 = vadd.f32 %v802_v33, %v617_v34  ;;  %v627_v37 = vadd.f32 %v802_v33, %v618_v35 }
 0x2fc   : > { %vm628_vm6 = vcmp.ge.f32.partialorder %v626_v36, 0.0  ;;  %v630_v38 = vmul.f32 0.01, %v626_v36  ;;  %vm629_vm7 = vcmp.ge.f32.partialorder %v627_v37, 0.0  ;;  %v631_v39 = vmul.f32 0.01, %v627_v37 }
 0x2fe   : > { %v632_v40 = vsel %vm628_vm6, %v626_v36, %v630_v38  ;;  %v633_v41 = vsel %vm629_vm7, %v627_v37, %v631_v39 }
 0x2ff   : > { %v634_v42 = vadd.f32 %v632_v40, %v1229_v21  ;;  %v635_v43 = vadd.f32 %v633_v41, %v1231_v22 }
 0x301   : > { %636 = vst.msk [vmem:[#allocation2] sm:$0xff] %vm462_vm4, %v634_v42  ;;  %637 = vst.msk [vmem:[#allocation2 + $0x8] sm:$0xff] %vm462_vm4, %v635_v43 }
 0x302 PF: > { %p803_p7 = scmp.ne.s32.totalorder %s1026_s12, 1 }
 0x303   : > { %642 = vst.msk [vmem:[%s1209_s30] sm:$0xff] (!%p803_p7), %vm462_vm4, %v575_v62  ;;  %643 = vst.msk [vmem:[%s1209_s30 + $0x8] sm:$0xff] (!%p803_p7), %vm462_vm4, %v576_v1 }
 0x304   : > { %641 = sbr.rel (%p803_p7) target bundleno = 779 (0x30b), region = 60 }
 0x30b PF: > { %s812_s29 = sshll.u32 %s1030_s13, 8  ;;  %s658_s25 = sshll.u32 %s1209_s30, 4  ;;  %s1278_s25 = int_to_ptr.vmem [resolvable:$true] %s658_s25 }
 0x30c   : > { %s1275_s22 = scalar_lea.hbm %s1342_s8, %s812_s29  ;;  %s1358_s12 = sand.u32 1, %s1018_s11  }
 0x30d   : > { %s1282_s27 = scalar_lea.sflag [#allocation8], %s1358_s12  ;;  %s946_s18 = scalar_lea.vmem %s1278_s25, 256 }
 0x30e   : > { %p947_p9 = scmp.ne.s32.totalorder %s1278_s25, %s946_s18  ;;  %s1048_s13 = smov [#allocation7]  }
 0x30f   : > { %s950_s23 = sshll.u32 %s1048_s13, 4  ;;  %s951_s23 = int_to_ptr.vmem [resolvable:$false] %s950_s23 }
 0x310   : > { %p948_p10 = pnand %p947_p9, %p1148_p8  ;;  %s952_s24 = scalar_lea.vmem %s951_s23, 512 }
 0x311   : > { %p953_p12 = scmp.lt.s32.totalorder %s1278_s25, %s951_s23  ;;  %p954_p13 = scmp.lt.s32.totalorder %s952_s24, %s946_s18 }
 0x312   : > { %p949_p11 = pneg %p948_p10 }
 0x313   : > { %p955_p1 = por %p954_p13, %p953_p12 }
 0x315   : > { %p956_p2 = pnand %p955_p1, %p949_p11 }
 0x317   : > { %959 = shalt.err (!%p956_p2)
}
 0x318   : > { %s960_s30 = scalar_lea.hbm %s1275_s22, 256  ;;  %s964_s15 = scalar_lea.hbm %s1342_s8, 1024 }
 0x319   : > { %p961_p3 = scmp.ne.s32.totalorder %s1275_s22, %s960_s30  ;;  %p965_p6 = scmp.lt.u32.totalorder %s1275_s22, %s1342_s8 }
 0x31a   : > { %p966_p7 = scmp.lt.u32.totalorder %s964_s15, %s960_s30  ;;  %p968_p10 = scmp.lt.u32.totalorder %s960_s30, %s1275_s22 }
 0x31b   : > { %p962_p4 = pnand %p961_p3, %p1148_p8 }
 0x31c   : > { %p967_p9 = por %p966_p7, %p965_p6 }
 0x31d   : > { %p963_p5 = pneg %p962_p4 }
 0x31e   : > { %p969_p11 = por %p968_p10, %p967_p9 }
 0x320   : > { %p970_p12 = pnand %p969_p11, %p963_p5 }
 0x322   : > { %973 = shalt.err (!%p970_p12)
}
 0x323   : > { %s1049_s0 = smov 128   ;;  %s1050_s19 = smov 8  }
 0x324   : > { %844 = dma.vmem_to_hbm [thread:$0]  (%p1148_p8), %s1278_s25, 256, %s1275_s22, %s1282_s27, %s1049_s0, %s1049_s0, %s1050_s19  }
 0x325 PF: > { %p850_p13 = scmp.ge.s32.totalorder %s1042_s16, 2  ;;  %s673_s17 = sand.u32 1, %s1014_s10  }
 0x326   : > { %s674_s26 = scalar_lea.sflag [#allocation8], %s673_s17 }
 0x327   : > { %p847_p1 = pnand %p850_p13, %p1158_p0 }
 0x329   : > { %1009 = dma.done.wait (!%p847_p1), %s674_s26, 256  }
 0x32a   : > { %1011 = vsyncadd (!%p847_p1), %s674_s26, 4294967040  ;;  %s27_s16 = sadd.s32 1, %s1042_s16   ;;  %s1360_s12 = sld [smem:[#allocation11_spill]] }
 0x32b   : > { %p24_p2 = scmp.ge.s32.totalorder %s27_s16, 10   ;;  %s1361_s0 = sld [smem:[#allocation17_spill]] }
 0x32c   : > { %s1362_s18 = sld [smem:[#allocation12_spill]]  ;;  %s1363_s13 = sld [smem:[#allocation13_spill]] }
 0x32d   : > { %s1364_s14 = sld [smem:[#allocation14_spill]]  ;;  %s1365_s15 = sld [smem:[#allocation15_spill]] }
 0x32e   : > { %s1366_s10 = smov %s1018_s11  ;;  %26 = sbr.rel (!%p24_p2) target bundleno = 20 (0x14), region = 110 }
 0x330   : > { %s1367_s11 = smov %s1360_s12 }
 0x332   : > { %s1368_s12 = smov %s1362_s18 }
 0x335   :  { %679 = vsyncpa [#allocation8], 1 }
 0x336   :  { %681 = vsyncpa [#allocation8 + $0x1], 1 }

</bundles_post_ra>
